<compile_context>
chip_gen: v7x
topology: tpu7x:2x2x1
jax: 0.10.0
libtpu: 0.0.40
codegen_flags: <defaults>
</compile_context>

<pallas_src>
import functools

import jax
import jax.numpy as jnp
from jax import lax
from jax.experimental import pallas as pl
from jax.experimental.pallas import tpu as pltpu

N_CLASS = 2
ALPHA = 0.5
BETA = 0.5
SMOOTH = 1.0          # Tversky smoothing constant
LANE = 128
MAX_TILE = 8192       # large lane tiles: mem-bound kernels want >= 2048 lanes


def _pick_tile(n, max_tile=MAX_TILE):
    """Largest power-of-two multiple of 128 <= max_tile that divides n."""
    t = max_tile
    while t >= LANE:
        if n % t == 0:
            return t
        t //= 2
    raise ValueError(f"pixel count {n} must be a multiple of {LANE}")


# --------------------------------------------------------------------------
# Kernel 1: class-axis softmax + Lovasz error map + Tversky reductions.
# Grid (B, HW // tile); logits block (C, tile), labels block (1, tile) int32.
# TP / sum(p) / class-count accumulate into resident (C, 1) outputs.
# --------------------------------------------------------------------------
def _softmax_stats_kernel(logits_ref, labels_ref, err_ref, tp_ref, sp_ref, gc_ref):
    b = pl.program_id(0)
    i = pl.program_id(1)

    @pl.when(jnp.logical_and(b == 0, i == 0))
    def _init():
        tp_ref[...] = jnp.zeros_like(tp_ref)
        sp_ref[...] = jnp.zeros_like(sp_ref)
        gc_ref[...] = jnp.zeros_like(gc_ref)

    # Upcast after the DMA: bf16 inputs stay bf16 over HBM, f32 in-register.
    x = logits_ref[...].astype(jnp.float32)                 # (C, T)
    lab = labels_ref[...]                                    # (1, T) int32
    cls = lax.broadcasted_iota(jnp.int32, x.shape, 0)
    g = (cls == lab).astype(jnp.float32)                     # one-hot built in VMEM

    m = jnp.max(x, axis=0, keepdims=True)
    e = jnp.exp(x - m)
    p = e / jnp.sum(e, axis=0, keepdims=True)                # softmax over classes
    # (pl.reciprocal(..., approx=True) is available here, but the kernel is
    #  HBM-bound, so exact division is free and keeps numerics reference-exact.)

    err_ref[...] = jnp.abs(g - p)                            # Lovasz errors

    tp_ref[...] += jnp.sum(p * g, axis=1, keepdims=True)     # TP
    sp_ref[...] += jnp.sum(p, axis=1, keepdims=True)         # sum(p): FP = sum(p) - TP
    gc_ref[...] += jnp.sum(g, axis=1, keepdims=True)         # class count: FN = count - TP


def softmax_and_stats(logits_b_c_hw, labels_b_1_hw):
    B, C, HW = logits_b_c_hw.shape
    tile = _pick_tile(HW)
    nb = HW // tile
    N = B * HW
    out_shapes = (
        jax.ShapeDtypeStruct((C, N), jnp.float32),   # |onehot - softmax|
        jax.ShapeDtypeStruct((C, 1), jnp.float32),   # TP
        jax.ShapeDtypeStruct((C, 1), jnp.float32),   # sum(p)
        jax.ShapeDtypeStruct((C, 1), jnp.float32),   # class count
    )
    # VMEM footprint per step is tiny even at 8192 lanes (<< default scoped
    # limit on every generation), so no vmem_limit_bytes bump is required.
    return pl.pallas_call(
        _softmax_stats_kernel,
        out_shape=out_shapes,
        grid=(B, nb),
        in_specs=[pl.BlockSpec((None, C, tile), lambda b, i: (b, 0, i)),
                  pl.BlockSpec((None, 1, tile), lambda b, i: (b, 0, i))],
        out_specs=(pl.BlockSpec((C, tile), lambda b, i: (0, b * nb + i)),
                   pl.BlockSpec((C, 1), lambda b, i: (0, 0)),
                   pl.BlockSpec((C, 1), lambda b, i: (0, 0)),
                   pl.BlockSpec((C, 1), lambda b, i: (0, 0))),
        compiler_params=pltpu.CompilerParams(
            dimension_semantics=("arbitrary", "arbitrary")),
    )(logits_b_c_hw, labels_b_1_hw)


# --------------------------------------------------------------------------
# Kernel 2: streamed Lovasz gradient dot product.
# grad[j] = jaccard[j] - jaccard[j-1] is computed directly from the inclusive
# and exclusive cumulative sums, so tiles need no cross-tile carry and the
# kernel is VMEM-flat for any N.
# --------------------------------------------------------------------------
def _lovasz_kernel(err_ref, gt_ref, cum_ref, gts_ref, loss_ref):
    i = pl.program_id(0)

    @pl.when(i == 0)
    def _init():
        loss_ref[...] = jnp.zeros_like(loss_ref)

    e = err_ref[...]                                  # (C, T) sorted errors (desc)
    g = gt_ref[...]                                   # (C, T) sorted one-hot
    cum = cum_ref[...]                                # (C, T) global inclusive cumsum(g)
    gts = gts_ref[...]                                # (C, 1) per-class pixel counts

    T = e.shape[1]
    pos0 = (lax.broadcasted_iota(jnp.int32, e.shape, 1)
            + i * T).astype(jnp.float32)              # global 0-based position j

    cum_excl = cum - g                                # exclusive cumsum = cum[j-1]
    i_prev = gts - cum_excl                           # intersection at j-1
    u_prev = gts + pos0 - cum_excl                    # union at j-1 (0 only when j==0 and gts==0)
    safe_u = jnp.where(u_prev == 0.0, 1.0, u_prev)
    ratio_prev = jnp.where(u_prev == 0.0, 1.0, i_prev / safe_u)
    i_cur = gts - cum                                 # intersection at j
    u_cur = gts + pos0 + 1.0 - cum                    # union at j (always >= 1)

    # grad[0] = jaccard[0]; grad[j] = jaccard[j] - jaccard[j-1]
    #         = I[j-1]/U[j-1] - I[j]/U[j]
    grad = ratio_prev - i_cur / u_cur

    loss_ref[...] += jnp.sum(e * grad, axis=1, keepdims=True)


def lovasz_per_class(err_sorted, gt_sorted, cumsum_gt, gts):
    C, N = err_sorted.shape
    tile = _pick_tile(N)
    return pl.pallas_call(
        _lovasz_kernel,
        out_shape=jax.ShapeDtypeStruct((C, 1), jnp.float32),
        grid=(N // tile,),
        in_specs=[pl.BlockSpec((C, tile), lambda i: (0, i)),
                  pl.BlockSpec((C, tile), lambda i: (0, i)),
                  pl.BlockSpec((C, tile), lambda i: (0, i)),
                  pl.BlockSpec((C, 1), lambda i: (0, 0))],
        out_specs=pl.BlockSpec((C, 1), lambda i: (0, 0)),
        compiler_params=pltpu.CompilerParams(
            dimension_semantics=("arbitrary",)),
    )(err_sorted, gt_sorted, cumsum_gt, gts)


# --------------------------------------------------------------------------
# TL_loss forward
# --------------------------------------------------------------------------
@functools.partial(jax.jit, static_argnames=("alpha", "beta", "n_class"))
def tl_loss(outputs_nchw, labels_nhw, alpha=ALPHA, beta=BETA, n_class=N_CLASS):
    B, C, H, W = outputs_nchw.shape
    assert C == n_class
    HW = H * W
    assert HW % LANE == 0, "H*W must be a multiple of 128"

    # Free reshapes only: no materialized transpose, no f32 upcast in HBM,
    # no one-hot materialization — the kernels do that work in VMEM.
    logits = outputs_nchw.reshape(B, C, HW)
    labels = labels_nhw.reshape(B, 1, HW).astype(jnp.int32)

    errors, tp, sp, gc = softmax_and_stats(logits, labels)
    tp, sp, gc = tp[:, 0], sp[:, 0], gc[:, 0]
    fp = sp - tp          # sum(p * (1 - g))
    fn = gc - tp          # sum((1 - p) * g)

    # Tversky loss: 1 - mean_c TI_c
    ti = (tp + SMOOTH) / (tp + alpha * fp + beta * fn + SMOOTH)
    tver_loss = 1.0 - jnp.mean(ti)

    # Lovasz-Softmax loss (flattened over batch, averaged over all classes).
    # TODO(synk): descending sort + gather + cumsum have no clean Pallas TPU
    #             primitive; kept in plain JAX as glue around kernel 2.
    order = jnp.argsort(-errors, axis=1)
    err_sorted = jnp.take_along_axis(errors, order, axis=1)
    lab_flat = labels_nhw.reshape(-1).astype(jnp.int32)        # b, h, w order
    lab_sorted = jnp.take(lab_flat, order)                     # (C, N) int32 gather
    gt_sorted = (lab_sorted ==
                 jnp.arange(C, dtype=jnp.int32)[:, None]).astype(jnp.float32)
    cumsum_gt = jnp.cumsum(gt_sorted, axis=1)

    # TODO(synk): averages over ALL classes (as before); some LovaszSoftmax
    #             variants average over classes present in the batch only.
    per_class = lovasz_per_class(err_sorted, gt_sorted, cumsum_gt,
                                 gc[:, None])[:, 0]
    losm_loss = jnp.mean(per_class)

    return 0.5 * losm_loss + 0.5 * tver_loss


# --------------------------------------------------------------------------
# Pure-JAX reference (mirrors the PyTorch formulation) for a sanity check.
# --------------------------------------------------------------------------
def _reference_tl_loss(outputs, labels, alpha=ALPHA, beta=BETA):
    B, C, H, W = outputs.shape
    logits = jnp.transpose(outputs, (1, 0, 2, 3)).reshape(C, -1).astype(jnp.float32)
    onehot = jax.nn.one_hot(labels.reshape(-1), C, dtype=jnp.float32).T
    p = jax.nn.softmax(logits, axis=0)

    tp = jnp.sum(p * onehot, axis=1)
    fp = jnp.sum(p * (1.0 - onehot), axis=1)
    fn = jnp.sum((1.0 - p) * onehot, axis=1)
    ti = (tp + SMOOTH) / (tp + alpha * fp + beta * fn + SMOOTH)
    tver = 1.0 - jnp.mean(ti)

    errors = jnp.abs(onehot - p)
    order = jnp.argsort(-errors, axis=1)
    e_s = jnp.take_along_axis(errors, order, axis=1)
    g_s = jnp.take_along_axis(onehot, order, axis=1)
    gts = jnp.sum(g_s, axis=1, keepdims=True)
    inter = gts - jnp.cumsum(g_s, axis=1)
    union = gts + jnp.cumsum(1.0 - g_s, axis=1)
    jac = 1.0 - inter / union
    grad = jnp.concatenate([jac[:, :1], jac[:, 1:] - jac[:, :-1]], axis=1)
    losm = jnp.mean(jnp.sum(e_s * grad, axis=1))
    return 0.5 * losm + 0.5 * tver


if __name__ == "__main__":
    key = jax.random.PRNGKey(0)
    k1, k2 = jax.random.split(key)

    B, C, H, W = 2, N_CLASS, 16, 16
    outputs = jax.random.normal(k1, (B, C, H, W), dtype=jnp.float32)
    labels = jax.random.randint(k2, (B, H, W), 0, N_CLASS, dtype=jnp.int32)

    loss = tl_loss(outputs, labels)
    jax.block_until_ready(loss)
    assert loss.shape == () and bool(jnp.isfinite(loss))

    ref = _reference_tl_loss(outputs, labels)
    assert jnp.allclose(loss, ref, atol=1e-4, rtol=1e-4), (float(loss), float(ref))

    print("KERNEL_OK")
</pallas_src>

<mosaic_0001>
module attributes {stable_mosaic.version = 11 : i64} {
  func.func @_softmax_stats_kernel(%arg0: i32, %arg1: i32, %arg2: memref<1x2x256xf32, #tpu.memory_space<vmem>>, %arg3: memref<1x1x256xi32, #tpu.memory_space<vmem>>, %arg4: memref<2x256xf32, #tpu.memory_space<vmem>>, %arg5: memref<2x1xf32, #tpu.memory_space<vmem>>, %arg6: memref<2x1xf32, #tpu.memory_space<vmem>>, %arg7: memref<2x1xf32, #tpu.memory_space<vmem>>) attributes {dimension_semantics = [#tpu.dimension_semantics<arbitrary>, #tpu.dimension_semantics<arbitrary>], iteration_bounds = array<i64: 2, 1>, scalar_prefetch = 0 : i64, scratch_operands = 0 : i64, tpu.core_type = #tpu.core_type<tc>, window_params = [{transform_indices = @transform_0, window_bounds = array<i64: 1, 2, 256>}, {transform_indices = @transform_1, window_bounds = array<i64: 1, 1, 256>}, {transform_indices = @transform_2, window_bounds = array<i64: 2, 256>}, {pipeline_mode = #tpu.pipeline_mode<synchronous>, transform_indices = @transform_3, window_bounds = array<i64: 2, 1>}, {pipeline_mode = #tpu.pipeline_mode<synchronous>, transform_indices = @transform_4, window_bounds = array<i64: 2, 1>}, {pipeline_mode = #tpu.pipeline_mode<synchronous>, transform_indices = @transform_5, window_bounds = array<i64: 2, 1>}]} {
    %c0_i32 = arith.constant 0 : i32
    %0 = arith.cmpi eq, %arg0, %c0_i32 : i32
    %c0_i32_0 = arith.constant 0 : i32
    %1 = arith.cmpi eq, %arg1, %c0_i32_0 : i32
    %2 = arith.andi %0, %1 : i1
    %3 = arith.extui %2 : i1 to i32
    %c0_i32_1 = arith.constant 0 : i32
    %4 = arith.cmpi ne, %3, %c0_i32_1 : i32
    scf.if %4 {
      %cst_25 = arith.constant 0.000000e+00 : f32
      %42 = vector.broadcast %cst_25 : f32 to vector<2x1xf32>
      %c0_26 = arith.constant 0 : index
      %c0_27 = arith.constant 0 : index
      %43 = vector.load %arg5[%c0_26, %c0_27] : memref<2x1xf32, #tpu.memory_space<vmem>>, vector<2x1xf32>
      tpu.vector_store %arg5[%c0_26, %c0_27], %42 {strides = array<i32>} : memref<2x1xf32, #tpu.memory_space<vmem>>, vector<2x1xf32>,
      %cst_28 = arith.constant 0.000000e+00 : f32
      %44 = vector.broadcast %cst_28 : f32 to vector<2x1xf32>
      %c0_29 = arith.constant 0 : index
      %c0_30 = arith.constant 0 : index
      %45 = vector.load %arg6[%c0_29, %c0_30] : memref<2x1xf32, #tpu.memory_space<vmem>>, vector<2x1xf32>
      tpu.vector_store %arg6[%c0_29, %c0_30], %44 {strides = array<i32>} : memref<2x1xf32, #tpu.memory_space<vmem>>, vector<2x1xf32>,
      %cst_31 = arith.constant 0.000000e+00 : f32
      %46 = vector.broadcast %cst_31 : f32 to vector<2x1xf32>
      %c0_32 = arith.constant 0 : index
      %c0_33 = arith.constant 0 : index
      %47 = vector.load %arg7[%c0_32, %c0_33] : memref<2x1xf32, #tpu.memory_space<vmem>>, vector<2x1xf32>
      tpu.vector_store %arg7[%c0_32, %c0_33], %46 {strides = array<i32>} : memref<2x1xf32, #tpu.memory_space<vmem>>, vector<2x1xf32>,
    } else {
    }
    %c0 = arith.constant 0 : index
    %c0_2 = arith.constant 0 : index
    %c0_3 = arith.constant 0 : index
    %5 = vector.load %arg2[%c0, %c0_2, %c0_3] : memref<1x2x256xf32, #tpu.memory_space<vmem>>, vector<1x2x256xf32>
    %6 = vector.shape_cast %5 : vector<1x2x256xf32> to vector<2x256xf32>
    %c0_4 = arith.constant 0 : index
    %c0_5 = arith.constant 0 : index
    %c0_6 = arith.constant 0 : index
    %7 = vector.load %arg3[%c0_4, %c0_5, %c0_6] : memref<1x1x256xi32, #tpu.memory_space<vmem>>, vector<1x1x256xi32>
    %8 = vector.shape_cast %7 : vector<1x1x256xi32> to vector<1x256xi32>
    %9 = tpu.iota {dimensions = array<i32: 0>} : vector<2x256xi32>
    %10 = vector.broadcast %8 : vector<1x256xi32> to vector<2x256xi32>
    %11 = arith.cmpi eq, %9, %10 : vector<2x256xi32>
    %12 = arith.extui %11 : vector<2x256xi1> to vector<2x256xi32>
    %13 = arith.sitofp %12 : vector<2x256xi32> to vector<2x256xf32>
    %cst = arith.constant dense<0xFF800000> : vector<256xf32>
    %14 = vector.multi_reduction <maximumf>, %6, %cst [0] : vector<2x256xf32> to vector<256xf32>
    %15 = vector.shape_cast %14 : vector<256xf32> to vector<1x256xf32>
    %16 = vector.broadcast %15 : vector<1x256xf32> to vector<2x256xf32>
    %17 = arith.subf %6, %16 : vector<2x256xf32>
    %18 = math.exp %17 : vector<2x256xf32>
    %cst_7 = arith.constant dense<0.000000e+00> : vector<256xf32>
    %19 = vector.multi_reduction <add>, %18, %cst_7 [0] : vector<2x256xf32> to vector<256xf32>
    %20 = vector.shape_cast %19 : vector<256xf32> to vector<1x256xf32>
    %21 = vector.broadcast %20 : vector<1x256xf32> to vector<2x256xf32>
    %22 = arith.divf %18, %21 : vector<2x256xf32>
    %23 = arith.subf %13, %22 : vector<2x256xf32>
    %24 = math.absf %23 : vector<2x256xf32>
    %c0_8 = arith.constant 0 : index
    %c0_9 = arith.constant 0 : index
    %25 = vector.load %arg4[%c0_8, %c0_9] : memref<2x256xf32, #tpu.memory_space<vmem>>, vector<2x256xf32>
    tpu.vector_store %arg4[%c0_8, %c0_9], %24 {strides = array<i32>} : memref<2x256xf32, #tpu.memory_space<vmem>>, vector<2x256xf32>,
    %c0_10 = arith.constant 0 : index
    %c0_11 = arith.constant 0 : index
    %26 = vector.load %arg5[%c0_10, %c0_11] : memref<2x1xf32, #tpu.memory_space<vmem>>, vector<2x1xf32>
    %27 = arith.mulf %22, %13 : vector<2x256xf32>
    %cst_12 = arith.constant dense<0.000000e+00> : vector<2xf32>
    %28 = vector.multi_reduction <add>, %27, %cst_12 [1] : vector<2x256xf32> to vector<2xf32>
    %29 = vector.shape_cast %28 : vector<2xf32> to vector<2x1xf32>
    %30 = arith.addf %26, %29 : vector<2x1xf32>
    %c0_13 = arith.constant 0 : index
    %c0_14 = arith.constant 0 : index
    %31 = vector.load %arg5[%c0_13, %c0_14] : memref<2x1xf32, #tpu.memory_space<vmem>>, vector<2x1xf32>
    tpu.vector_store %arg5[%c0_13, %c0_14], %30 {strides = array<i32>} : memref<2x1xf32, #tpu.memory_space<vmem>>, vector<2x1xf32>,
    %c0_15 = arith.constant 0 : index
    %c0_16 = arith.constant 0 : index
    %32 = vector.load %arg6[%c0_15, %c0_16] : memref<2x1xf32, #tpu.memory_space<vmem>>, vector<2x1xf32>
    %cst_17 = arith.constant dense<0.000000e+00> : vector<2xf32>
    %33 = vector.multi_reduction <add>, %22, %cst_17 [1] : vector<2x256xf32> to vector<2xf32>
    %34 = vector.shape_cast %33 : vector<2xf32> to vector<2x1xf32>
    %35 = arith.addf %32, %34 : vector<2x1xf32>
    %c0_18 = arith.constant 0 : index
    %c0_19 = arith.constant 0 : index
    %36 = vector.load %arg6[%c0_18, %c0_19] : memref<2x1xf32, #tpu.memory_space<vmem>>, vector<2x1xf32>
    tpu.vector_store %arg6[%c0_18, %c0_19], %35 {strides = array<i32>} : memref<2x1xf32, #tpu.memory_space<vmem>>, vector<2x1xf32>,
    %c0_20 = arith.constant 0 : index
    %c0_21 = arith.constant 0 : index
    %37 = vector.load %arg7[%c0_20, %c0_21] : memref<2x1xf32, #tpu.memory_space<vmem>>, vector<2x1xf32>
    %cst_22 = arith.constant dense<0.000000e+00> : vector<2xf32>
    %38 = vector.multi_reduction <add>, %13, %cst_22 [1] : vector<2x256xf32> to vector<2xf32>
    %39 = vector.shape_cast %38 : vector<2xf32> to vector<2x1xf32>
    %40 = arith.addf %37, %39 : vector<2x1xf32>
    %c0_23 = arith.constant 0 : index
    %c0_24 = arith.constant 0 : index
    %41 = vector.load %arg7[%c0_23, %c0_24] : memref<2x1xf32, #tpu.memory_space<vmem>>, vector<2x1xf32>
    tpu.vector_store %arg7[%c0_23, %c0_24], %40 {strides = array<i32>} : memref<2x1xf32, #tpu.memory_space<vmem>>, vector<2x1xf32>,
    return
  }
  func.func @transform_0(%arg0: i32, %arg1: i32) -> (i32, i32, i32) {
    %c0_i32 = arith.constant 0 : i32
    %c0_i32_0 = arith.constant 0 : i32
    return %arg0, %c0_i32, %arg1 : i32, i32, i32
  }
  func.func @transform_1(%arg0: i32, %arg1: i32) -> (i32, i32, i32) {
    %c0_i32 = arith.constant 0 : i32
    %c0_i32_0 = arith.constant 0 : i32
    return %arg0, %c0_i32, %arg1 : i32, i32, i32
  }
  func.func @transform_2(%arg0: i32, %arg1: i32) -> (i32, i32) {
    %c1_i32 = arith.constant 1 : i32
    %0 = arith.muli %arg0, %c1_i32 : i32
    %1 = arith.addi %0, %arg1 : i32
    %c0_i32 = arith.constant 0 : i32
    %c0_i32_0 = arith.constant 0 : i32
    return %c0_i32, %1 : i32, i32
  }
  func.func @transform_3(%arg0: i32, %arg1: i32) -> (i32, i32) {
    %c0_i32 = arith.constant 0 : i32
    %c0_i32_0 = arith.constant 0 : i32
    %c0_i32_1 = arith.constant 0 : i32
    return %c0_i32, %c0_i32_0 : i32, i32
  }
  func.func @transform_4(%arg0: i32, %arg1: i32) -> (i32, i32) {
    %c0_i32 = arith.constant 0 : i32
    %c0_i32_0 = arith.constant 0 : i32
    %c0_i32_1 = arith.constant 0 : i32
    return %c0_i32, %c0_i32_0 : i32, i32
  }
  func.func @transform_5(%arg0: i32, %arg1: i32) -> (i32, i32) {
    %c0_i32 = arith.constant 0 : i32
    %c0_i32_0 = arith.constant 0 : i32
    %c0_i32_1 = arith.constant 0 : i32
    return %c0_i32, %c0_i32_0 : i32, i32
  }
}

module attributes {stable_mosaic.version = 11 : i64} {
  func.func @_lovasz_kernel(%arg0: i32, %arg1: memref<2x512xf32, #tpu.memory_space<vmem>>, %arg2: memref<2x512xf32, #tpu.memory_space<vmem>>, %arg3: memref<2x512xf32, #tpu.memory_space<vmem>>, %arg4: memref<2x1xf32, #tpu.memory_space<vmem>>, %arg5: memref<2x1xf32, #tpu.memory_space<vmem>>) attributes {dimension_semantics = [#tpu.dimension_semantics<arbitrary>], iteration_bounds = array<i64: 1>, scalar_prefetch = 0 : i64, scratch_operands = 0 : i64, tpu.core_type = #tpu.core_type<tc>, window_params = [{transform_indices = @transform_0, window_bounds = array<i64: 2, 512>}, {transform_indices = @transform_1, window_bounds = array<i64: 2, 512>}, {transform_indices = @transform_2, window_bounds = array<i64: 2, 512>}, {pipeline_mode = #tpu.pipeline_mode<synchronous>, transform_indices = @transform_3, window_bounds = array<i64: 2, 1>}, {pipeline_mode = #tpu.pipeline_mode<synchronous>, transform_indices = @transform_4, window_bounds = array<i64: 2, 1>}]} {
    %c0_i32 = arith.constant 0 : i32
    %0 = arith.cmpi eq, %arg0, %c0_i32 : i32
    %1 = arith.extui %0 : i1 to i32
    %c0_i32_0 = arith.constant 0 : i32
    %2 = arith.cmpi ne, %1, %c0_i32_0 : i32
    scf.if %2 {
      %cst_17 = arith.constant 0.000000e+00 : f32
      %42 = vector.broadcast %cst_17 : f32 to vector<2x1xf32>
      %c0_18 = arith.constant 0 : index
      %c0_19 = arith.constant 0 : index
      %43 = vector.load %arg5[%c0_18, %c0_19] : memref<2x1xf32, #tpu.memory_space<vmem>>, vector<2x1xf32>
      tpu.vector_store %arg5[%c0_18, %c0_19], %42 {strides = array<i32>} : memref<2x1xf32, #tpu.memory_space<vmem>>, vector<2x1xf32>,
    } else {
    }
    %c0 = arith.constant 0 : index
    %c0_1 = arith.constant 0 : index
    %3 = vector.load %arg1[%c0, %c0_1] : memref<2x512xf32, #tpu.memory_space<vmem>>, vector<2x512xf32>
    %c0_2 = arith.constant 0 : index
    %c0_3 = arith.constant 0 : index
    %4 = vector.load %arg2[%c0_2, %c0_3] : memref<2x512xf32, #tpu.memory_space<vmem>>, vector<2x512xf32>
    %c0_4 = arith.constant 0 : index
    %c0_5 = arith.constant 0 : index
    %5 = vector.load %arg3[%c0_4, %c0_5] : memref<2x512xf32, #tpu.memory_space<vmem>>, vector<2x512xf32>
    %c0_6 = arith.constant 0 : index
    %c0_7 = arith.constant 0 : index
    %6 = vector.load %arg4[%c0_6, %c0_7] : memref<2x1xf32, #tpu.memory_space<vmem>>, vector<2x1xf32>
    %7 = tpu.iota {dimensions = array<i32: 1>} : vector<2x512xi32>
    %c512_i32 = arith.constant 512 : i32
    %8 = arith.muli %arg0, %c512_i32 : i32
    %9 = vector.broadcast %8 : i32 to vector<2x512xi32>
    %10 = arith.addi %7, %9 : vector<2x512xi32>
    %11 = arith.sitofp %10 : vector<2x512xi32> to vector<2x512xf32>
    %12 = arith.subf %5, %4 : vector<2x512xf32>
    %13 = vector.broadcast %6 : vector<2x1xf32> to vector<2x512xf32>
    %14 = arith.subf %13, %12 : vector<2x512xf32>
    %15 = vector.broadcast %6 : vector<2x1xf32> to vector<2x512xf32>
    %16 = arith.addf %15, %11 : vector<2x512xf32>
    %17 = arith.subf %16, %12 : vector<2x512xf32>
    %cst = arith.constant 0.000000e+00 : f32
    %18 = vector.broadcast %cst : f32 to vector<2x512xf32>
    %19 = arith.cmpf oeq, %17, %18 : vector<2x512xf32>
    %cst_8 = arith.constant 1.000000e+00 : f32
    %20 = vector.broadcast %cst_8 : f32 to vector<2x512xf32>
    %21 = arith.select %19, %20, %17 : vector<2x512xi1>, vector<2x512xf32>
    %cst_9 = arith.constant 0.000000e+00 : f32
    %22 = vector.broadcast %cst_9 : f32 to vector<2x512xf32>
    %23 = arith.cmpf oeq, %17, %22 : vector<2x512xf32>
    %24 = arith.divf %14, %21 : vector<2x512xf32>
    %cst_10 = arith.constant 1.000000e+00 : f32
    %25 = vector.broadcast %cst_10 : f32 to vector<2x512xf32>
    %26 = arith.select %23, %25, %24 : vector<2x512xi1>, vector<2x512xf32>
    %27 = vector.broadcast %6 : vector<2x1xf32> to vector<2x512xf32>
    %28 = arith.subf %27, %5 : vector<2x512xf32>
    %29 = vector.broadcast %6 : vector<2x1xf32> to vector<2x512xf32>
    %30 = arith.addf %29, %11 : vector<2x512xf32>
    %cst_11 = arith.constant 1.000000e+00 : f32
    %31 = vector.broadcast %cst_11 : f32 to vector<2x512xf32>
    %32 = arith.addf %30, %31 : vector<2x512xf32>
    %33 = arith.subf %32, %5 : vector<2x512xf32>
    %34 = arith.divf %28, %33 : vector<2x512xf32>
    %35 = arith.subf %26, %34 : vector<2x512xf32>
    %c0_12 = arith.constant 0 : index
    %c0_13 = arith.constant 0 : index
    %36 = vector.load %arg5[%c0_12, %c0_13] : memref<2x1xf32, #tpu.memory_space<vmem>>, vector<2x1xf32>
    %37 = arith.mulf %3, %35 : vector<2x512xf32>
    %cst_14 = arith.constant dense<0.000000e+00> : vector<2xf32>
    %38 = vector.multi_reduction <add>, %37, %cst_14 [1] : vector<2x512xf32> to vector<2xf32>
    %39 = vector.shape_cast %38 : vector<2xf32> to vector<2x1xf32>
    %40 = arith.addf %36, %39 : vector<2x1xf32>
    %c0_15 = arith.constant 0 : index
    %c0_16 = arith.constant 0 : index
    %41 = vector.load %arg5[%c0_15, %c0_16] : memref<2x1xf32, #tpu.memory_space<vmem>>, vector<2x1xf32>
    tpu.vector_store %arg5[%c0_15, %c0_16], %40 {strides = array<i32>} : memref<2x1xf32, #tpu.memory_space<vmem>>, vector<2x1xf32>,
    return
  }
  func.func @transform_0(%arg0: i32) -> (i32, i32) {
    %c0_i32 = arith.constant 0 : i32
    %c0_i32_0 = arith.constant 0 : i32
    return %c0_i32, %arg0 : i32, i32
  }
  func.func @transform_1(%arg0: i32) -> (i32, i32) {
    %c0_i32 = arith.constant 0 : i32
    %c0_i32_0 = arith.constant 0 : i32
    return %c0_i32, %arg0 : i32, i32
  }
  func.func @transform_2(%arg0: i32) -> (i32, i32) {
    %c0_i32 = arith.constant 0 : i32
    %c0_i32_0 = arith.constant 0 : i32
    return %c0_i32, %arg0 : i32, i32
  }
  func.func @transform_3(%arg0: i32) -> (i32, i32) {
    %c0_i32 = arith.constant 0 : i32
    %c0_i32_0 = arith.constant 0 : i32
    %c0_i32_1 = arith.constant 0 : i32
    return %c0_i32, %c0_i32_0 : i32, i32
  }
  func.func @transform_4(%arg0: i32) -> (i32, i32) {
    %c0_i32 = arith.constant 0 : i32
    %c0_i32_0 = arith.constant 0 : i32
    %c0_i32_1 = arith.constant 0 : i32
    return %c0_i32, %c0_i32_0 : i32, i32
  }
}

</mosaic_0001>

<bundles_post_ra>
// kernel: neg.1
= control target key start
LH: loop header
LB: loop body
LE: loop exit
PB: predicated region body
PF: predicated region fallthrough
CT: control target
= control target key end

     0   :  { %s72_s0 = inlined_call_operand.vmem [shape: f32[2,512], index: 0, kind: input, shape index: {}]   ;;  %s73_s1 = inlined_call_operand.vmem [shape: f32[2,512], index: 1, kind: output, shape index: {}]  }
   0x1   :  { %v2_v0 = vld [vmem:[%s72_s0] sm:$0x3]  ;;  %v32_v1 = vld [vmem:[%s72_s0 + $0x2] sm:$0x3]  ;;  %v34_v2 = vld [vmem:[%s72_s0 + $0x4] sm:$0x3] }
   0x2   :  { %v5_v3 = vxor.u32 2147483648, %v2_v0  ;;  %v12_v4 = vxor.u32 2147483648, %v32_v1  ;;  %v20_v5 = vxor.u32 2147483648, %v34_v2  ;;  %v36_v6 = vld [vmem:[%s72_s0 + $0x6] sm:$0x3] }
   0x3   :  { %v28_v7 = vxor.u32 2147483648, %v36_v6 }
   0x4   :  { %7 = vst [vmem:[%s73_s1] sm:$0x3] %v5_v3  ;;  %33 = vst [vmem:[%s73_s1 + $0x2] sm:$0x3] %v12_v4 }
   0x5   :  { %35 = vst [vmem:[%s73_s1 + $0x4] sm:$0x3] %v20_v5  ;;  %37 = vst [vmem:[%s73_s1 + $0x6] sm:$0x3] %v28_v7 }

// kernel: tl_loss.2
= control target key start
LH: loop header
LB: loop body
LE: loop exit
PB: predicated region body
PF: predicated region fallthrough
CT: control target
= control target key end

     0   :  { %s678_s18 = smov 0   ;;  %s680_s19 = smov 0   ;;  %s754_s0 = inlined_call_operand.vmem [shape: f32[2,2,256], index: 0, kind: input, shape index: {}]   ;;  %s755_s1 = inlined_call_operand.vmem [shape: s32[2,1,256], index: 1, kind: input, shape index: {}]   ;;  %s756_s2 = inlined_call_operand.vmem [shape: f32[2,512], index: 2, kind: output, shape index: {0}]   ;;  %s757_s3 = inlined_call_operand.vmem [shape: f32[2,1], index: 3, kind: output, shape index: {1}]   ;;  %s758_s4 = inlined_call_operand.vmem [shape: f32[2,1], index: 4, kind: output, shape index: {2}]   ;;  %s759_s5 = inlined_call_operand.vmem [shape: f32[2,1], index: 5, kind: output, shape index: {3}]  }
   0x1   :  { %s682_s20 = smov 0  }
   0x2 LB: > { %s28_s21 = sadd.s32 1, %s639_s19  ;;  %p576_p0 = scmp.ge.s32.totalorder %s643_s20, 1  ;;  %s643_s20 = sphi %s682_s20, %s16_s20   ;;  %s639_s19 = sphi %s680_s19, %s761_s19   ;;  %s635_s18 = sphi %s678_s18, %s760_s18  }
   0x3   : > { %p30_p1 = scmp.ge.s32.totalorder %s28_s21, 2  ;;  %p216_p2 = scmp.lt.s32.totalorder %s643_s20, 3 }
   0x5   : > { %s763_s21 = smov (%p30_p1, %s28_s21), 0  ;;  %p217_p3 = pnand %p576_p0, %p216_p2 }
   0x6   : > { %p258_p4 = scmp.lt.s32.totalorder (!%p217_p3), %s635_s18, 1  ;;  %s580_s22 = sshll.u32 (!%p217_p3), %s635_s18, 1 }
   0x7   : > { %220 = sbr.rel (%p217_p3) target bundleno = 259 (0x103), region = 28  ;;  %p278_p5 = scmp.lt.s32.totalorder (!%p217_p3), %s580_s22, 3 }
   0x8   : > { %p284_p6 = scmp.eq.s32.totalorder (!%p217_p3), %s635_s18, 0 }
   0xe   : > { %s765_s18 = smov (!%p258_p4, %s635_s18), 1  ;;  %s767_s22 = smov (!%p278_p5, %s580_s22), 3 }
   0xf   : > { %s588_s23 = sshll.u32 %s765_s18, 2  ;;  %s579_s24 = sshll.u32 %s765_s18, 1  ;;  %vm290_vm0 = vcmask (%p284_p6), 1024   ;;  %v645_v0 = vmov (%p284_p6), 0.0  }
  0x10   : > { %s265_s27 = scalar_lea.vmem %s754_s0, %s588_s23  ;;  %s274_s30 = scalar_lea.vmem %s755_s1, %s579_s24  ;;  %291 = vst.msk [vmem:[%s757_s3] sm:$0x3] (%p284_p6), %vm290_vm0, %v645_v0  ;;  %292 = vst.msk [vmem:[%s758_s4] sm:$0x3] (%p284_p6), %vm290_vm0, %v645_v0 }
  0x11   : > { %s581_s6 = sshll.u32 %s767_s22, 1  ;;  %289 = sbr.rel (!%p284_p6) target bundleno = 24 (0x18), region = 32  ;;  %293 = vst.msk [vmem:[%s759_s5] sm:$0x3] (%p284_p6), %vm290_vm0, %v645_v0 }
  0x12   : > { %s705_s9 = scalar_lea.vmem %s756_s2, %s581_s6 }
  0x18 PF: > { %v296_v1 = vlaneseq  ;;  %v646_v3 = vmov 1983009808   ;;  %v295_v5 = vld [vmem:[%s274_s30] sm:$0x3]  ;;  %vm323_vm1 = vcmask 1041408   ;;  %v647_v14 = vmov 0.0  }
  0x19   : > { %v314_v4 = vunpack.c.l.s4 %v646_v3  ;;  %v294_v9 = vld [vmem:[%s265_s27] sm:$0xf]  ;;  %vm447_vm4 = vcmask 1024  }
  0x1a   : > { %v297_v2 = vshrl.u32 %v296_v1, 7 }
  0x1b   : > { %v315_v8 = vunpack.c.0.s8 %v314_v4 }
  0x1c   : > { %v300_v6 = vsub.s32 0, %v297_v2  ;;  %v304_v7 = vsub.s32 1, %v297_v2 }
  0x1d   : > { %v318_v12 = vsub.s32 %v315_v8, %v297_v2 }
  0x1e   : > { %v301_v10 = vrot.slane %v295_v5, %v300_v6  ;;  %v305_v11 = vrot.slane %v295_v5, %v304_v7 }
  0x1f   : > { %v319_v13 = vrot.slane %v294_v9, %v318_v12 }
  0x20   : > { %vm306_vm2 = vcmp.eq.s32.totalorder %v297_v2, %v301_v10  ;;  %vm307_vm3 = vcmp.eq.s32.totalorder %v297_v2, %v305_v11 }
  0x21   : > { %v583_v15 = vsel %vm306_vm2, 1.0, %v647_v14  ;;  %v584_v16 = vsel %vm307_vm3, 1.0, %v647_v14  ;;  %v320_v17 = vcombine.high %v319_v13, %v319_v13  ;;  %v324_v18 = vsel %vm323_vm1, %v319_v13, -inf }
  0x22   : > { %v458_v19 = vsel %vm323_vm1, %v583_v15, 0.0  ;;  %v325_v20 = vrot.slane %v324_v18, 4  ;;  %v459_v21 = vsel %vm323_vm1, %v584_v16, 0.0  ;;  %v420_v58 = vcombine.low %v583_v15, %v584_v16 }
  0x23   : > { %v331_v22 = vsel %vm323_vm1, %v320_v17, -inf  ;;  %v460_v23 = vadd.f32 %v459_v21, %v458_v19 }
  0x24   : > { %v326_v24 = vmax.f32 %v324_v18, %v325_v20  ;;  %v332_v25 = vrot.slane %v331_v22, 4  ;;  %v427_v59 = vrot.slane %v420_v58, %v318_v12  ;;  %v449_v20 = vld [vmem:[%s758_s4] sm:$0x3] }
  0x25   : > { %461 = vadd.xlane.f32.xlu1 %v460_v23 }
  0x26   : > { %v327_v26 = vrot.slane %v326_v24, 2  ;;  %v333_v27 = vmax.f32 %v331_v22, %v332_v25 }
  0x28   : > { %v328_v28 = vmax.f32 %v326_v24, %v327_v26  ;;  %v334_v29 = vrot.slane %v333_v27, 2 }
  0x2a   : > { %v329_v30 = vrot.slane %v328_v28, 1  ;;  %v335_v31 = vmax.f32 %v333_v27, %v334_v29 }
  0x2c   : > { %v330_v32 = vmax.f32 %v328_v28, %v329_v30  ;;  %v336_v33 = vrot.slane %v335_v31, 1 }
  0x2e   : > { %v337_v34 = vmax.f32 %v335_v31, %v336_v33 }
  0x30   : > { %v340_v35 = vcombine.low %v330_v32, %v337_v34 }
  0x32   : > { %v347_v36 = vrot.slane %v340_v35, %v318_v12 }
  0x34   : > { %v349_v37 = vsub.f32 %v294_v9, %v347_v36 }
  0x36   : > { %v350_v38 = vmul.f32 1.442695, %v349_v37 }
  0x38   : > { %617 = vpow2.f32 %v350_v38 }
  0x42   : > { %v618_v39 = vpop.eup %617 }
  0x43   : > { %v359_v40 = vrot.slane %v618_v39, %v318_v12 }
  0x45   : > { %v360_v41 = vcombine.high %v359_v40, %v359_v40  ;;  %v363_v42 = vsel %vm323_vm1, %v359_v40, 0.0 }
  0x46   : > { %v364_v43 = vrot.slane %v363_v42, 4 }
  0x47   : > { %v370_v44 = vsel %vm323_vm1, %v360_v41, 0.0 }
  0x48   : > { %v365_v45 = vadd.f32 %v364_v43, %v363_v42  ;;  %v371_v46 = vrot.slane %v370_v44, 4 }
  0x4a   : > { %v366_v47 = vrot.slane %v365_v45, 2  ;;  %v372_v48 = vadd.f32 %v371_v46, %v370_v44 }
  0x4c   : > { %v367_v49 = vadd.f32 %v366_v47, %v365_v45  ;;  %v373_v50 = vrot.slane %v372_v48, 2 }
  0x4e   : > { %v368_v51 = vrot.slane %v367_v49, 1  ;;  %v374_v52 = vadd.f32 %v373_v50, %v372_v48 }
  0x50   : > { %v369_v53 = vadd.f32 %v368_v51, %v367_v49  ;;  %v375_v54 = vrot.slane %v374_v52, 1 }
  0x52   : > { %v376_v55 = vadd.f32 %v375_v54, %v374_v52 }
  0x54   : > { %v379_v56 = vcombine.low %v369_v53, %v376_v55 }
  0x56   : > { %v386_v57 = vrot.slane %v379_v56, %v318_v12 }
  0x58   : > { %619 = vrcp.f32 %v386_v57 }
  0x62   : > { %v620_v60 = vpop.eup %619 }
  0x63   : > { %v389_v61 = vmul.f32 %v620_v60, %v618_v39 }
  0x65   : > { %v429_v62 = vmul.f32 %v427_v59, %v389_v61  ;;  %v397_v63 = vrot.slane %v389_v61, %v318_v12 }
  0x67   : > { %v437_v0 = vrot.slane %v429_v62, %v318_v12  ;;  %v398_v1 = vcombine.high %v397_v63, %v397_v63  ;;  %v401_v2 = vsub.f32 %v583_v15, %v397_v63  ;;  %v450_v8 = vsel %vm323_vm1, %v397_v63, 0.0  ;;  %v457_v12 = vld [vmem:[%s759_s5] sm:$0x3] }
  0x69   : > { %v438_v3 = vcombine.high %v437_v0, %v437_v0  ;;  %v441_v4 = vsel %vm323_vm1, %v437_v0, 0.0  ;;  %v403_v5 = vand.u32 2147483647, %v401_v2  ;;  %v402_v6 = vsub.f32 %v584_v16, %v398_v1  ;;  %v417_v16 = vld [vmem:[%s757_s3] sm:$0x3] }
  0x6a   : > { %v451_v9 = vsel %vm323_vm1, %v398_v1, 0.0 }
  0x6b   : > { %v442_v7 = vsel %vm323_vm1, %v438_v3, 0.0  ;;  %v404_v11 = vand.u32 2147483647, %v402_v6  ;;  %v452_v13 = vadd.f32 %v451_v9, %v450_v8 }
  0x6c   : > { %v443_v10 = vadd.f32 %v442_v7, %v441_v4 }
  0x6d   : > { %v407_v14 = vcombine.low %v403_v5, %v404_v11 }
  0x6e   : > { %444 = vadd.xlane.f32.xlu0 %v443_v10 }
  0x6f   : > { %585 = vst.sshfl [vmem:[%s705_s9] sm:$0x33 pattern:$0x76325410] %v407_v14 }
  0x72   : > { %453 = vadd.xlane.f32.xlu0 %v452_v13 }
  0xb2   : > { %v462_v15 = vpop.xlane.xlu1 %461 }
  0xb3   : > { %v463_v17 = vadd.f32 %v462_v15, %v457_v12 }
  0xb5   : > { %464 = vst.msk [vmem:[%s759_s5] sm:$0x3] %vm447_vm4, %v463_v17 }
  0xfb   : > { %v445_v18 = vpop.xlane.xlu0 %444 }
  0xfc   : > { %v446_v19 = vadd.f32 %v445_v18, %v417_v16 }
  0xfe   : > { %448 = vst.msk [vmem:[%s757_s3] sm:$0x3] %vm447_vm4, %v446_v19 }
  0xff   : > { %v454_v21 = vpop.xlane.xlu0 %453 }
 0x100   : > { %v455_v22 = vadd.f32 %v454_v21, %v449_v20 }
 0x102   : > { %456 = vst.msk [vmem:[%s758_s4] sm:$0x3] %vm447_vm4, %v455_v22 }
 0x103 PF: > { %s16_s20 = sadd.s32 1, %s643_s20   ;;  %s760_s18 = smov %s639_s19 }
 0x104   : > { %p13_p7 = scmp.ge.s32.totalorder %s16_s20, 4   ;;  %s761_s19 = smov %s763_s21 }
 0x106   :  { %15 = sbr.rel (!%p13_p7) target bundleno = 2 (0x2), region = 89 }

// kernel: tl_loss.3
= control target key start
LH: loop header
LB: loop body
LE: loop exit
PB: predicated region body
PF: predicated region fallthrough
CT: control target
= control target key end

     0   :  { %v232_v0 = vmov 0   ;;  %vm21_vm0 = vcmask 1024   ;;  %v233_v2 = vmov 0.0   ;;  %v27_v3 = vlaneseq  ;;  %s315_s3 = inlined_call_operand.vmem [shape: f32[2,1], index: 3, kind: input, shape index: {}]   ;;  %s316_s4 = inlined_call_operand.vmem [shape: f32[2,1], index: 4, kind: output, shape index: {}]   ;;  %s317_s1 = inlined_call_operand.vmem [shape: f32[2,512], index: 1, kind: input, shape index: {}]   ;;  %s318_s2 = inlined_call_operand.vmem [shape: f32[2,512], index: 2, kind: input, shape index: {}]   ;;  %s319_s0 = inlined_call_operand.vmem [shape: f32[2,512], index: 0, kind: input, shape index: {}]  }
   0x1   :  { %214 = vset.pattern.permute.xlu0 %v232_v0  ;;  %v26_v1 = vld [vmem:[%s315_s3] sm:$0x3]  ;;  %22 = vst.msk [vmem:[%s316_s4] sm:$0x3] %vm21_vm0, %v233_v2  ;;  %v234_v4 = vmov 1983009808  }
   0x2   :  { %45 = vperm.xlu0 %214, %v26_v1   ;;  %v51_v5 = vunpack.c.l.s4 %v234_v4  ;;  %v24_v6 = vld [vmem:[%s317_s1] sm:$0xff]  ;;  %v54_v10 = vshrl.u32 %v27_v3, 7  ;;  %v28_v11 = vand.u32 127, %v27_v3  ;;  %vm194_vm5 = vcmask 1041408  }
   0x3   :  { %v25_v7 = vld [vmem:[%s318_s2] sm:$0xff] }
   0x4   :  { %v42_v8 = vsub.f32 %v25_v7, %v24_v6  ;;  %v52_v9 = vunpack.c.0.s8 %v51_v5  ;;  %v29_v14 = vadd.s32 128, %v28_v11  ;;  %v30_v15 = vadd.s32 256, %v28_v11 }
   0x5   :  { %v31_v16 = vadd.s32 384, %v28_v11  ;;  %v38_v19 = vcvt.s32.f32 %v28_v11  ;;  %v103_v23 = vcombine.high %v25_v7, %v25_v7 }
   0x6   :  { %v49_v12 = vcombine.high %v42_v8, %v42_v8  ;;  %v273_v13 = vsub.s32 %v52_v9, %v54_v10  ;;  %v39_v20 = vcvt.s32.f32 %v29_v14  ;;  %v40_v21 = vcvt.s32.f32 %v30_v15 }
   0x7   :  { %v41_v22 = vcvt.s32.f32 %v31_v16 }
   0x8   :  { %v56_v17 = vrot.slane %v42_v8, %v273_v13  ;;  %v63_v18 = vrot.slane %v49_v12, %v273_v13  ;;  %v110_v27 = vrot.slane %v25_v7, %v273_v13  ;;  %v117_v32 = vrot.slane %v103_v23, %v273_v13 }
   0xa   :  { %v64_v25 = vcombine.high %v56_v17, %v56_v17  ;;  %v65_v26 = vcombine.high %v63_v18, %v63_v18  ;;  %v118_v37 = vcombine.high %v110_v27, %v110_v27  ;;  %v119_v47 = vcombine.high %v117_v32, %v117_v32 }
  0x81   :  { %v277_v24 = vpop.permute.xlu0 %45 }
  0x82   :  { %v74_v28 = vadd.f32 %v277_v24, %v38_v19  ;;  %v75_v29 = vadd.f32 %v277_v24, %v39_v20  ;;  %v76_v30 = vadd.f32 %v277_v24, %v40_v21  ;;  %v77_v31 = vadd.f32 %v277_v24, %v41_v22 }
  0x83   :  { %v70_v51 = vsub.f32 %v277_v24, %v56_v17  ;;  %v71_v53 = vsub.f32 %v277_v24, %v64_v25  ;;  %v72_v55 = vsub.f32 %v277_v24, %v63_v18  ;;  %v73_v58 = vsub.f32 %v277_v24, %v65_v26 }
  0x84   :  { %v78_v33 = vsub.f32 %v74_v28, %v56_v17  ;;  %v79_v34 = vsub.f32 %v75_v29, %v64_v25  ;;  %v80_v35 = vsub.f32 %v76_v30, %v63_v18  ;;  %v81_v36 = vsub.f32 %v77_v31, %v65_v26 }
  0x85   :  { %v128_v38 = vadd.f32 1.0, %v74_v28  ;;  %v129_v39 = vadd.f32 1.0, %v75_v29  ;;  %v130_v40 = vadd.f32 1.0, %v76_v30  ;;  %v131_v44 = vadd.f32 1.0, %v77_v31 }
  0x86   :  { %vm82_vm1 = vcmp.eq.f32.partialorder %v78_v33, 0.0  ;;  %vm83_vm2 = vcmp.eq.f32.partialorder %v79_v34, 0.0  ;;  %vm84_vm3 = vcmp.eq.f32.partialorder %v80_v35, 0.0  ;;  %vm85_vm4 = vcmp.eq.f32.partialorder %v81_v36, 0.0 }
  0x87   :  { %v86_v41 = vsel %vm82_vm1, 1.0, %v78_v33  ;;  %v87_v42 = vsel %vm83_vm2, 1.0, %v79_v34  ;;  %v88_v43 = vsel %vm84_vm3, 1.0, %v80_v35  ;;  %v89_v45 = vsel %vm85_vm4, 1.0, %v81_v36 }
  0x88   :  { %216 = vrcp.f32 %v86_v41  ;;  %v132_v46 = vsub.f32 %v128_v38, %v110_v27  ;;  %v133_v48 = vsub.f32 %v129_v39, %v118_v37  ;;  %v134_v49 = vsub.f32 %v130_v40, %v117_v32  ;;  %v148_v39 = vld [vmem:[%s316_s4] sm:$0x3] }
  0x89   :  { %218 = vrcp.f32 %v87_v42  ;;  %v135_v50 = vsub.f32 %v131_v44, %v119_v47  ;;  %v124_v62 = vsub.f32 %v277_v24, %v110_v27  ;;  %v125_v2 = vsub.f32 %v277_v24, %v118_v37 }
  0x8a   :  { %220 = vrcp.f32 %v88_v43  ;;  %v126_v5 = vsub.f32 %v277_v24, %v117_v32  ;;  %v127_v9 = vsub.f32 %v277_v24, %v119_v47  ;;  %v23_v24 = vld [vmem:[%s319_s0] sm:$0xff] }
  0x8b   :  { %222 = vrcp.f32 %v89_v45 }
  0x8c   :  { %224 = vrcp.f32 %v132_v46 }
  0x8d   :  { %226 = vrcp.f32 %v133_v48 }
  0x8e   :  { %228 = vrcp.f32 %v134_v49 }
  0x8f   :  { %230 = vrcp.f32 %v135_v50 }
  0x92   :  { %v217_v52 = vpop.eup %216 }
  0x93   :  { %v219_v54 = vpop.eup %218  ;;  %v91_v56 = vmul.f32 %v217_v52, %v70_v51 }
  0x94   :  { %v221_v57 = vpop.eup %220  ;;  %v93_v59 = vmul.f32 %v219_v54, %v71_v53 }
  0x95   :  { %v223_v60 = vpop.eup %222  ;;  %v95_v61 = vmul.f32 %v221_v57, %v72_v55  ;;  %v98_v1 = vsel %vm82_vm1, 1.0, %v91_v56 }
  0x96   :  { %v225_v63 = vpop.eup %224  ;;  %v97_v0 = vmul.f32 %v223_v60, %v73_v58  ;;  %v99_v4 = vsel %vm83_vm2, 1.0, %v93_v59 }
  0x97   :  { %v227_v3 = vpop.eup %226  ;;  %v137_v6 = vmul.f32 %v225_v63, %v124_v62  ;;  %v100_v8 = vsel %vm84_vm3, 1.0, %v95_v61 }
  0x98   :  { %v229_v7 = vpop.eup %228  ;;  %v139_v10 = vmul.f32 %v227_v3, %v125_v2  ;;  %v101_v12 = vsel %vm85_vm4, 1.0, %v97_v0 }
  0x99   :  { %v231_v11 = vpop.eup %230  ;;  %v141_v14 = vmul.f32 %v229_v7, %v126_v5  ;;  %v144_v15 = vsub.f32 %v98_v1, %v137_v6 }
  0x9a   :  { %v143_v16 = vmul.f32 %v231_v11, %v127_v9  ;;  %v145_v17 = vsub.f32 %v99_v4, %v139_v10 }
  0x9b   :  { %v146_v18 = vsub.f32 %v100_v8, %v141_v14 }
  0x9c   :  { %v147_v19 = vsub.f32 %v101_v12, %v143_v16  ;;  %v153_v20 = vcombine.low %v144_v15, %v145_v17 }
  0x9e   :  { %v154_v21 = vcombine.low %v146_v18, %v147_v19  ;;  %v161_v22 = vrot.slane %v153_v20, %v273_v13 }
  0xa0   :  { %v168_v23 = vrot.slane %v154_v21, %v273_v13 }
  0xa2   :  { %v169_v25 = vcombine.low %v161_v22, %v168_v23 }
  0xa4   :  { %v171_v26 = vmul.f32 %v169_v25, %v23_v24 }
  0xa6   :  { %v173_v27 = vcombine.high %v171_v26, %v171_v26  ;;  %v180_v28 = vrot.slane %v171_v26, %v273_v13 }
  0xa8   :  { %v187_v29 = vrot.slane %v173_v27, %v273_v13  ;;  %v188_v30 = vcombine.high %v180_v28, %v180_v28  ;;  %v195_v32 = vsel %vm194_vm5, %v180_v28, 0.0 }
  0xaa   :  { %v189_v31 = vcombine.high %v187_v29, %v187_v29  ;;  %v196_v33 = vsel %vm194_vm5, %v188_v30, 0.0  ;;  %v198_v35 = vsel %vm194_vm5, %v187_v29, 0.0 }
  0xab   :  { %v197_v34 = vadd.f32 %v196_v33, %v195_v32 }
  0xac   :  { %v200_v37 = vsel %vm194_vm5, %v189_v31, 0.0 }
  0xad   :  { %v199_v36 = vadd.f32 %v198_v35, %v197_v34 }
  0xaf   :  { %v201_v38 = vadd.f32 %v200_v37, %v199_v36 }
  0xb1   :  { %202 = vadd.xlane.f32.xlu0 %v201_v38 }
 0x13e   :  { %v203_v40 = vpop.xlane.xlu0 %202 }
 0x13f   :  { %v204_v41 = vadd.f32 %v203_v40, %v148_v39 }
 0x141   :  { %206 = vst.msk [vmem:[%s316_s4] sm:$0x3] %vm21_vm0, %v204_v41 }

</bundles_post_ra>
